<compile_context>
chip_gen: v5e
topology: v5e:2x2
jax: 0.10.0
libtpu: 0.0.40
codegen_flags: <defaults>
</compile_context>

<pallas_src>
import functools

import numpy as np
import jax
import jax.numpy as jnp
from jax.experimental import pallas as pl
from jax.experimental.pallas import tpu as pltpu


def _mcc_np_kernel(preds_ref, labels_ref, cos_ref, sin_ref, icos_ref, isin_ref,
                   mcc_ref, negp_ref, *, n_time, n_band):
    x = preds_ref[...]            # (TB, T) float32
    y = labels_ref[...]           # (TB, T) float32
    tb = x.shape[0]
    nf = jnp.float32(n_time)

    # ---- Neg_Pearson (per row, on the raw signals), lane reductions ----
    sum_x = jnp.sum(x, axis=-1, keepdims=True)
    sum_y = jnp.sum(y, axis=-1, keepdims=True)
    sum_xy = jnp.sum(x * y, axis=-1, keepdims=True)
    sum_x2 = jnp.sum(x * x, axis=-1, keepdims=True)
    sum_y2 = jnp.sum(y * y, axis=-1, keepdims=True)
    var_prod = (nf * sum_x2 - sum_x * sum_x) * (nf * sum_y2 - sum_y * sum_y)
    # clamp: f32 cancellation can push the product a hair below 0 for degenerate rows
    pearson = (nf * sum_xy - sum_x * sum_y) / jnp.sqrt(
        jnp.maximum(var_prod, jnp.float32(1e-12)))
    negp_ref[...] = jnp.float32(1.0) - pearson

    # ---- mean removal + unbiased std (torch.std default, correction=1) ----
    xn = x - sum_x / nf
    yn = y - sum_y / nf
    inv_nm1 = jnp.float32(1.0 / (n_time - 1))
    std_x = jnp.sqrt(jnp.sum(xn * xn, axis=-1, keepdims=True) * inv_nm1)
    std_y = jnp.sqrt(jnp.sum(yn * yn, axis=-1, keepdims=True) * inv_nm1)
    denom_std = std_x * std_y

    # ---- rfft of zero-padded (2T) signals: one stacked MXU matmul per weight ----
    zz = jnp.concatenate([xn, yn], axis=0)                                    # (2*TB, T)
    f_re = jnp.dot(zz, cos_ref[...], preferred_element_type=jnp.float32)      # (2*TB, T+1)
    f_im = jnp.dot(zz, sin_ref[...], preferred_element_type=jnp.float32)
    p_re, l_re = f_re[:tb], f_re[tb:]
    p_im, l_im = f_im[:tb], f_im[tb:]

    # cross-spectrum X = preds_fft * conj(labels_fft)
    x_re = p_re * l_re + p_im * l_im
    x_im = p_im * l_re - p_re * l_im
    mag = jnp.sqrt(x_re * x_re + x_im * x_im)

    # ---- band energies: DFT columns were permuted so bins [0, n_band) are in-band ----
    col = jax.lax.broadcasted_iota(jnp.int32, mag.shape, 1)
    in_band = col < n_band
    use_energy = jnp.sum(jnp.where(in_band, mag, 0.0), axis=-1, keepdims=True)
    zero_energy = jnp.sum(jnp.where(in_band, 0.0, mag), axis=-1, keepdims=True)
    denom_e = use_energy + zero_energy
    energy_ratio = jnp.where(denom_e > 0.0,
                             use_energy / jnp.where(denom_e > 0.0, denom_e, 1.0),
                             jnp.float32(1.0))

    # ---- band-trimmed inverse rfft -> cross-correlation over 2T lags ----
    xr_b = x_re[:, :n_band]
    xi_b = x_im[:, :n_band]
    cc = (jnp.dot(xr_b, icos_ref[...], preferred_element_type=jnp.float32)
          + jnp.dot(xi_b, isin_ref[...], preferred_element_type=jnp.float32))  # (TB, 2T)
    max_cc = jnp.max(cc, axis=-1, keepdims=True)

    cov = max_cc / energy_ratio
    mcc_ref[...] = jnp.where(denom_std > 0.0,
                             cov / jnp.where(denom_std > 0.0, denom_std, 1.0),
                             jnp.float32(0.0))


def _round_up(x, m):
    return ((x + m - 1) // m) * m


def mcc_np_pallas(preds, labels, Fs=30, high_pass=250, low_pass=40):
    preds = preds.astype(jnp.float32)
    labels = labels.astype(jnp.float32)
    B, T = preds.shape
    assert labels.shape == (B, T)
    n_pad = 2 * T            # zero-padded FFT length (padded_N in the PyTorch code)
    n_freq = T + 1           # rfft bins
    Fn = Fs / 2.0

    # ---- in-band bins (freqs = linspace(0, Fs/2, T+1)) ----
    freqs = np.linspace(0.0, Fn, n_freq, dtype=np.float32)
    use = np.logical_and(freqs <= high_pass / 60.0, freqs >= low_pass / 60.0)
    band = np.nonzero(use)[0]
    rest = np.nonzero(np.logical_not(use))[0]
    n_band = int(band.size)
    assert n_band >= 1 and band[0] > 0 and band[-1] < T, "band must exclude DC/Nyquist"
    order = np.concatenate([band, rest])              # in-band bins first

    # ---- forward DFT matrices (rfft of zero-padded-to-2T signal), band-first columns ----
    t_idx = np.arange(T, dtype=np.float64)[:, None]
    k_idx = order.astype(np.float64)[None, :]
    ang = 2.0 * np.pi * t_idx * k_idx / n_pad
    cos_f = jnp.asarray(np.cos(ang), dtype=jnp.float32)       # (T, T+1)  real-part weights
    sin_f = jnp.asarray(-np.sin(ang), dtype=jnp.float32)      # (T, T+1)  imag-part weights

    # ---- band-trimmed inverse rfft matrices, scaled by 1/(2T) (irfft) and 1/(T-1) ----
    n_idx = np.arange(n_pad, dtype=np.float64)[None, :]
    th = 2.0 * np.pi * band.astype(np.float64)[:, None] * n_idx / n_pad
    sc = 2.0 / n_pad / (T - 1)
    icos = jnp.asarray(np.cos(th) * sc, dtype=jnp.float32)    # (n_band, 2T)
    isin = jnp.asarray(-np.sin(th) * sc, dtype=jnp.float32)   # (n_band, 2T)

    # ---- batch blocking (padded rows are replicated and sliced off afterwards) ----
    TB = min(_round_up(B, 8), 128)
    B_pad = _round_up(B, TB)
    if B_pad != B:
        preds = jnp.pad(preds, ((0, B_pad - B), (0, 0)), mode="edge")
        labels = jnp.pad(labels, ((0, B_pad - B), (0, 0)), mode="edge")

    kernel = functools.partial(_mcc_np_kernel, n_time=T, n_band=n_band)

    mcc_rows, negp_rows = pl.pallas_call(
        kernel,
        out_shape=(jax.ShapeDtypeStruct((B_pad, 1), jnp.float32),
                   jax.ShapeDtypeStruct((B_pad, 1), jnp.float32)),
        grid_spec=pltpu.PrefetchScalarGridSpec(
            num_scalar_prefetch=0,
            grid=(B_pad // TB,),
            in_specs=[
                pl.BlockSpec((TB, T), lambda i: (i, 0)),          # preds row-block
                pl.BlockSpec((TB, T), lambda i: (i, 0)),          # labels row-block
                pl.BlockSpec((T, n_freq), lambda i: (0, 0)),      # DFT cos (band-first cols)
                pl.BlockSpec((T, n_freq), lambda i: (0, 0)),      # DFT sin
                pl.BlockSpec((n_band, n_pad), lambda i: (0, 0)),  # inverse DFT cos (band only)
                pl.BlockSpec((n_band, n_pad), lambda i: (0, 0)),  # inverse DFT sin
            ],
            out_specs=[pl.BlockSpec((TB, 1), lambda i: (i, 0)),   # per-row MCC term
                       pl.BlockSpec((TB, 1), lambda i: (i, 0))],  # per-row 1 - pearson
        ),
        compiler_params=pltpu.CompilerParams(
            dimension_semantics=("parallel",)),
    )(preds, labels, cos_f, sin_f, icos, isin)

    mcc_loss = jnp.mean(mcc_rows[:B, 0])
    negp_loss = jnp.mean(negp_rows[:B, 0])
    return mcc_loss + negp_loss


def mcc_np_ref(preds, labels, Fs=30, high_pass=250, low_pass=40):
    """Pure-JAX mirror of MCC_NP.forward (uses jnp.fft)."""
    preds = preds.astype(jnp.float32)
    labels = labels.astype(jnp.float32)
    B, T = preds.shape
    # Neg_Pearson
    sum_x = preds.sum(-1)
    sum_y = labels.sum(-1)
    sum_xy = (preds * labels).sum(-1)
    sum_x2 = (preds * preds).sum(-1)
    sum_y2 = (labels * labels).sum(-1)
    pearson = (T * sum_xy - sum_x * sum_y) / jnp.sqrt(
        (T * sum_x2 - sum_x ** 2) * (T * sum_y2 - sum_y ** 2))
    negp_loss = jnp.mean(1.0 - pearson)
    # NegativeMaxCrossCov
    pn = preds - preds.mean(-1, keepdims=True)
    ln = labels - labels.mean(-1, keepdims=True)
    padded_N = 2 * T
    pfft = jnp.fft.rfft(pn, n=padded_N, axis=-1)
    lfft = jnp.fft.rfft(ln, n=padded_N, axis=-1)
    X = pfft * jnp.conj(lfft)
    Fn = Fs / 2.0
    freqs = jnp.linspace(0.0, Fn, X.shape[-1])
    use = jnp.logical_and(freqs <= high_pass / 60.0, freqs >= low_pass / 60.0)
    mag = jnp.abs(X)
    use_e = jnp.sum(jnp.where(use[None, :], mag, 0.0), axis=-1)
    zero_e = jnp.sum(jnp.where(use[None, :], 0.0, mag), axis=-1)
    denom = use_e + zero_e
    ratio = jnp.where(denom > 0, use_e / jnp.where(denom > 0, denom, 1.0), 1.0)
    Xm = jnp.where(use[None, :], X, 0.0 + 0.0j)
    cc = jnp.fft.irfft(Xm, n=padded_N, axis=-1) / (T - 1)
    max_cc = jnp.max(cc, axis=-1) / ratio
    # NegativeMaxCrossCorr
    std_p = jnp.std(preds, axis=-1, ddof=1)
    std_l = jnp.std(labels, axis=-1, ddof=1)
    d = std_p * std_l
    out = jnp.where(d > 0, max_cc / jnp.where(d > 0, d, 1.0), 0.0)
    mcc_loss = jnp.mean(out)
    return mcc_loss + negp_loss


if __name__ == "__main__":
    # Small shapes consistent with the forward: (batch=2, seq=128) rPPG-style signals.
    B, T, Fs = 2, 128, 30
    key = jax.random.PRNGKey(0)
    k1, k2 = jax.random.split(key)

    ts = jnp.arange(T, dtype=jnp.float32) / Fs
    hr = jnp.array([1.2, 1.8], dtype=jnp.float32)   # "heart rates" in Hz, inside the pass band
    labels = (jnp.sin(2.0 * np.pi * hr[:, None] * ts[None, :])
              + 0.02 * jax.random.normal(k2, (B, T), dtype=jnp.float32))
    preds = (jnp.sin(2.0 * np.pi * hr[:, None] * ts[None, :] + 0.3)
             + 0.1 * jax.random.normal(k1, (B, T), dtype=jnp.float32))

    loss = mcc_np_pallas(preds, labels, Fs=Fs)
    loss = jax.block_until_ready(loss)

    ref = mcc_np_ref(preds, labels, Fs=Fs)
    assert bool(jnp.isfinite(loss)), "kernel produced non-finite loss"
    assert abs(float(loss) - float(ref)) < 2e-2, (float(loss), float(ref))

    print("KERNEL_OK")
</pallas_src>

<mosaic_0001>
module attributes {stable_mosaic.version = 11 : i64} {
  func.func @_mcc_np_kernel(%arg0: i32, %arg1: memref<8x128xf32, #tpu.memory_space<vmem>>, %arg2: memref<8x128xf32, #tpu.memory_space<vmem>>, %arg3: memref<128x129xf32, #tpu.memory_space<vmem>>, %arg4: memref<128x129xf32, #tpu.memory_space<vmem>>, %arg5: memref<30x256xf32, #tpu.memory_space<vmem>>, %arg6: memref<30x256xf32, #tpu.memory_space<vmem>>, %arg7: memref<8x1xf32, #tpu.memory_space<vmem>>, %arg8: memref<8x1xf32, #tpu.memory_space<vmem>>) attributes {dimension_semantics = [#tpu.dimension_semantics<parallel>], iteration_bounds = array<i64: 1>, scalar_prefetch = 0 : i64, scratch_operands = 0 : i64, tpu.core_type = #tpu.core_type<tc>, window_params = [{transform_indices = @transform_0, window_bounds = array<i64: 8, 128>}, {transform_indices = @transform_1, window_bounds = array<i64: 8, 128>}, {pipeline_mode = #tpu.pipeline_mode<synchronous>, transform_indices = @transform_2, window_bounds = array<i64: 128, 129>}, {pipeline_mode = #tpu.pipeline_mode<synchronous>, transform_indices = @transform_3, window_bounds = array<i64: 128, 129>}, {pipeline_mode = #tpu.pipeline_mode<synchronous>, transform_indices = @transform_4, window_bounds = array<i64: 30, 256>}, {pipeline_mode = #tpu.pipeline_mode<synchronous>, transform_indices = @transform_5, window_bounds = array<i64: 30, 256>}, {transform_indices = @transform_6, window_bounds = array<i64: 8, 1>}, {transform_indices = @transform_7, window_bounds = array<i64: 8, 1>}]} {
    %c0 = arith.constant 0 : index
    %c0_0 = arith.constant 0 : index
    %0 = vector.load %arg1[%c0, %c0_0] : memref<8x128xf32, #tpu.memory_space<vmem>>, vector<8x128xf32>
    %c0_1 = arith.constant 0 : index
    %c0_2 = arith.constant 0 : index
    %1 = vector.load %arg2[%c0_1, %c0_2] : memref<8x128xf32, #tpu.memory_space<vmem>>, vector<8x128xf32>
    %cst = arith.constant dense<0.000000e+00> : vector<8xf32>
    %2 = vector.multi_reduction <add>, %0, %cst [1] : vector<8x128xf32> to vector<8xf32>
    %3 = vector.shape_cast %2 : vector<8xf32> to vector<8x1xf32>
    %cst_3 = arith.constant dense<0.000000e+00> : vector<8xf32>
    %4 = vector.multi_reduction <add>, %1, %cst_3 [1] : vector<8x128xf32> to vector<8xf32>
    %5 = vector.shape_cast %4 : vector<8xf32> to vector<8x1xf32>
    %6 = arith.mulf %0, %1 : vector<8x128xf32>
    %cst_4 = arith.constant dense<0.000000e+00> : vector<8xf32>
    %7 = vector.multi_reduction <add>, %6, %cst_4 [1] : vector<8x128xf32> to vector<8xf32>
    %8 = vector.shape_cast %7 : vector<8xf32> to vector<8x1xf32>
    %9 = arith.mulf %0, %0 : vector<8x128xf32>
    %cst_5 = arith.constant dense<0.000000e+00> : vector<8xf32>
    %10 = vector.multi_reduction <add>, %9, %cst_5 [1] : vector<8x128xf32> to vector<8xf32>
    %11 = vector.shape_cast %10 : vector<8xf32> to vector<8x1xf32>
    %12 = arith.mulf %1, %1 : vector<8x128xf32>
    %cst_6 = arith.constant dense<0.000000e+00> : vector<8xf32>
    %13 = vector.multi_reduction <add>, %12, %cst_6 [1] : vector<8x128xf32> to vector<8xf32>
    %14 = vector.shape_cast %13 : vector<8xf32> to vector<8x1xf32>
    %cst_7 = arith.constant 1.280000e+02 : f32
    %15 = vector.broadcast %cst_7 : f32 to vector<8x1xf32>
    %16 = arith.mulf %15, %11 : vector<8x1xf32>
    %17 = arith.mulf %3, %3 : vector<8x1xf32>
    %18 = arith.subf %16, %17 : vector<8x1xf32>
    %cst_8 = arith.constant 1.280000e+02 : f32
    %19 = vector.broadcast %cst_8 : f32 to vector<8x1xf32>
    %20 = arith.mulf %19, %14 : vector<8x1xf32>
    %21 = arith.mulf %5, %5 : vector<8x1xf32>
    %22 = arith.subf %20, %21 : vector<8x1xf32>
    %23 = arith.mulf %18, %22 : vector<8x1xf32>
    %cst_9 = arith.constant 1.280000e+02 : f32
    %24 = vector.broadcast %cst_9 : f32 to vector<8x1xf32>
    %25 = arith.mulf %24, %8 : vector<8x1xf32>
    %26 = arith.mulf %3, %5 : vector<8x1xf32>
    %27 = arith.subf %25, %26 : vector<8x1xf32>
    %cst_10 = arith.constant 9.99999996E-13 : f32
    %28 = vector.broadcast %cst_10 : f32 to vector<8x1xf32>
    %29 = arith.maximumf %23, %28 : vector<8x1xf32>
    %30 = math.sqrt %29 : vector<8x1xf32>
    %31 = arith.divf %27, %30 : vector<8x1xf32>
    %cst_11 = arith.constant 1.000000e+00 : f32
    %32 = vector.broadcast %cst_11 : f32 to vector<8x1xf32>
    %33 = arith.subf %32, %31 : vector<8x1xf32>
    %c0_12 = arith.constant 0 : index
    %c0_13 = arith.constant 0 : index
    %34 = vector.load %arg8[%c0_12, %c0_13] : memref<8x1xf32, #tpu.memory_space<vmem>>, vector<8x1xf32>
    tpu.vector_store %arg8[%c0_12, %c0_13], %33 {strides = array<i32>} : memref<8x1xf32, #tpu.memory_space<vmem>>, vector<8x1xf32>,
    %cst_14 = arith.constant 1.280000e+02 : f32
    %35 = vector.broadcast %cst_14 : f32 to vector<8x1xf32>
    %36 = arith.divf %3, %35 : vector<8x1xf32>
    %37 = vector.broadcast %36 : vector<8x1xf32> to vector<8x128xf32>
    %38 = arith.subf %0, %37 : vector<8x128xf32>
    %cst_15 = arith.constant 1.280000e+02 : f32
    %39 = vector.broadcast %cst_15 : f32 to vector<8x1xf32>
    %40 = arith.divf %5, %39 : vector<8x1xf32>
    %41 = vector.broadcast %40 : vector<8x1xf32> to vector<8x128xf32>
    %42 = arith.subf %1, %41 : vector<8x128xf32>
    %43 = arith.mulf %38, %38 : vector<8x128xf32>
    %cst_16 = arith.constant dense<0.000000e+00> : vector<8xf32>
    %44 = vector.multi_reduction <add>, %43, %cst_16 [1] : vector<8x128xf32> to vector<8xf32>
    %45 = vector.shape_cast %44 : vector<8xf32> to vector<8x1xf32>
    %cst_17 = arith.constant 0.00787401571 : f32
    %46 = vector.broadcast %cst_17 : f32 to vector<8x1xf32>
    %47 = arith.mulf %45, %46 : vector<8x1xf32>
    %48 = math.sqrt %47 : vector<8x1xf32>
    %49 = arith.mulf %42, %42 : vector<8x128xf32>
    %cst_18 = arith.constant dense<0.000000e+00> : vector<8xf32>
    %50 = vector.multi_reduction <add>, %49, %cst_18 [1] : vector<8x128xf32> to vector<8xf32>
    %51 = vector.shape_cast %50 : vector<8xf32> to vector<8x1xf32>
    %cst_19 = arith.constant 0.00787401571 : f32
    %52 = vector.broadcast %cst_19 : f32 to vector<8x1xf32>
    %53 = arith.mulf %51, %52 : vector<8x1xf32>
    %54 = math.sqrt %53 : vector<8x1xf32>
    %55 = arith.mulf %48, %54 : vector<8x1xf32>
    %56 = tpu.concatenate %38, %42 in 0 : vector<8x128xf32>, vector<8x128xf32> -> vector<16x128xf32>
    %c0_20 = arith.constant 0 : index
    %c0_21 = arith.constant 0 : index
    %57 = vector.load %arg3[%c0_20, %c0_21] : memref<128x129xf32, #tpu.memory_space<vmem>>, vector<128x129xf32>
    %cst_22 = arith.constant dense<0.000000e+00> : vector<16x129xf32>
    %58 = tpu.matmul %56, %57, %cst_22 {dimension_numbers = #tpu.dot_dimension_numbers<[1], [0], [0], [1], [0, 0, 1, 1], [], []>} : vector<16x128xf32>, vector<128x129xf32>, vector<16x129xf32> -> vector<16x129xf32>
    %c0_23 = arith.constant 0 : index
    %c0_24 = arith.constant 0 : index
    %59 = vector.load %arg4[%c0_23, %c0_24] : memref<128x129xf32, #tpu.memory_space<vmem>>, vector<128x129xf32>
    %cst_25 = arith.constant dense<0.000000e+00> : vector<16x129xf32>
    %60 = tpu.matmul %56, %59, %cst_25 {dimension_numbers = #tpu.dot_dimension_numbers<[1], [0], [0], [1], [0, 0, 1, 1], [], []>} : vector<16x128xf32>, vector<128x129xf32>, vector<16x129xf32> -> vector<16x129xf32>
    %61 = vector.extract_strided_slice %58 {offsets = [0, 0], sizes = [8, 129], strides = [1, 1]} : vector<16x129xf32> to vector<8x129xf32>
    %62 = vector.extract_strided_slice %58 {offsets = [8, 0], sizes = [8, 129], strides = [1, 1]} : vector<16x129xf32> to vector<8x129xf32>
    %63 = vector.extract_strided_slice %60 {offsets = [0, 0], sizes = [8, 129], strides = [1, 1]} : vector<16x129xf32> to vector<8x129xf32>
    %64 = vector.extract_strided_slice %60 {offsets = [8, 0], sizes = [8, 129], strides = [1, 1]} : vector<16x129xf32> to vector<8x129xf32>
    %65 = arith.mulf %61, %62 : vector<8x129xf32>
    %66 = arith.mulf %63, %64 : vector<8x129xf32>
    %67 = arith.addf %65, %66 : vector<8x129xf32>
    %68 = arith.mulf %63, %62 : vector<8x129xf32>
    %69 = arith.mulf %61, %64 : vector<8x129xf32>
    %70 = arith.subf %68, %69 : vector<8x129xf32>
    %71 = arith.mulf %67, %67 : vector<8x129xf32>
    %72 = arith.mulf %70, %70 : vector<8x129xf32>
    %73 = arith.addf %71, %72 : vector<8x129xf32>
    %74 = math.sqrt %73 : vector<8x129xf32>
    %75 = tpu.iota {dimensions = array<i32: 1>} : vector<8x129xi32>
    %c30_i32 = arith.constant 30 : i32
    %76 = vector.broadcast %c30_i32 : i32 to vector<8x129xi32>
    %77 = arith.cmpi slt, %75, %76 : vector<8x129xi32>
    %cst_26 = arith.constant 0.000000e+00 : f32
    %78 = vector.broadcast %cst_26 : f32 to vector<8x129xf32>
    %79 = arith.select %77, %74, %78 : vector<8x129xi1>, vector<8x129xf32>
    %cst_27 = arith.constant dense<0.000000e+00> : vector<8xf32>
    %80 = vector.multi_reduction <add>, %79, %cst_27 [1] : vector<8x129xf32> to vector<8xf32>
    %81 = vector.shape_cast %80 : vector<8xf32> to vector<8x1xf32>
    %cst_28 = arith.constant 0.000000e+00 : f32
    %82 = vector.broadcast %cst_28 : f32 to vector<8x129xf32>
    %83 = arith.select %77, %82, %74 : vector<8x129xi1>, vector<8x129xf32>
    %cst_29 = arith.constant dense<0.000000e+00> : vector<8xf32>
    %84 = vector.multi_reduction <add>, %83, %cst_29 [1] : vector<8x129xf32> to vector<8xf32>
    %85 = vector.shape_cast %84 : vector<8xf32> to vector<8x1xf32>
    %86 = arith.addf %81, %85 : vector<8x1xf32>
    %cst_30 = arith.constant 0.000000e+00 : f32
    %87 = vector.broadcast %cst_30 : f32 to vector<8x1xf32>
    %88 = arith.cmpf ogt, %86, %87 : vector<8x1xf32>
    %cst_31 = arith.constant 0.000000e+00 : f32
    %89 = vector.broadcast %cst_31 : f32 to vector<8x1xf32>
    %90 = arith.cmpf ogt, %86, %89 : vector<8x1xf32>
    %cst_32 = arith.constant 1.000000e+00 : f32
    %91 = vector.broadcast %cst_32 : f32 to vector<8x1xf32>
    %92 = arith.select %90, %86, %91 : vector<8x1xi1>, vector<8x1xf32>
    %93 = arith.divf %81, %92 : vector<8x1xf32>
    %cst_33 = arith.constant 1.000000e+00 : f32
    %94 = vector.broadcast %cst_33 : f32 to vector<8x1xf32>
    %95 = arith.select %88, %93, %94 : vector<8x1xi1>, vector<8x1xf32>
    %96 = vector.extract_strided_slice %67 {offsets = [0, 0], sizes = [8, 30], strides = [1, 1]} : vector<8x129xf32> to vector<8x30xf32>
    %97 = vector.extract_strided_slice %70 {offsets = [0, 0], sizes = [8, 30], strides = [1, 1]} : vector<8x129xf32> to vector<8x30xf32>
    %c0_34 = arith.constant 0 : index
    %c0_35 = arith.constant 0 : index
    %98 = vector.load %arg5[%c0_34, %c0_35] : memref<30x256xf32, #tpu.memory_space<vmem>>, vector<30x256xf32>
    %cst_36 = arith.constant dense<0.000000e+00> : vector<8x256xf32>
    %99 = tpu.matmul %96, %98, %cst_36 {dimension_numbers = #tpu.dot_dimension_numbers<[1], [0], [0], [1], [0, 0, 1, 1], [], []>} : vector<8x30xf32>, vector<30x256xf32>, vector<8x256xf32> -> vector<8x256xf32>
    %c0_37 = arith.constant 0 : index
    %c0_38 = arith.constant 0 : index
    %100 = vector.load %arg6[%c0_37, %c0_38] : memref<30x256xf32, #tpu.memory_space<vmem>>, vector<30x256xf32>
    %cst_39 = arith.constant dense<0.000000e+00> : vector<8x256xf32>
    %101 = tpu.matmul %97, %100, %cst_39 {dimension_numbers = #tpu.dot_dimension_numbers<[1], [0], [0], [1], [0, 0, 1, 1], [], []>} : vector<8x30xf32>, vector<30x256xf32>, vector<8x256xf32> -> vector<8x256xf32>
    %102 = arith.addf %99, %101 : vector<8x256xf32>
    %cst_40 = arith.constant dense<0xFF800000> : vector<8xf32>
    %103 = vector.multi_reduction <maximumf>, %102, %cst_40 [1] : vector<8x256xf32> to vector<8xf32>
    %104 = vector.shape_cast %103 : vector<8xf32> to vector<8x1xf32>
    %105 = arith.divf %104, %95 : vector<8x1xf32>
    %cst_41 = arith.constant 0.000000e+00 : f32
    %106 = vector.broadcast %cst_41 : f32 to vector<8x1xf32>
    %107 = arith.cmpf ogt, %55, %106 : vector<8x1xf32>
    %cst_42 = arith.constant 0.000000e+00 : f32
    %108 = vector.broadcast %cst_42 : f32 to vector<8x1xf32>
    %109 = arith.cmpf ogt, %55, %108 : vector<8x1xf32>
    %cst_43 = arith.constant 1.000000e+00 : f32
    %110 = vector.broadcast %cst_43 : f32 to vector<8x1xf32>
    %111 = arith.select %109, %55, %110 : vector<8x1xi1>, vector<8x1xf32>
    %112 = arith.divf %105, %111 : vector<8x1xf32>
    %cst_44 = arith.constant 0.000000e+00 : f32
    %113 = vector.broadcast %cst_44 : f32 to vector<8x1xf32>
    %114 = arith.select %107, %112, %113 : vector<8x1xi1>, vector<8x1xf32>
    %c0_45 = arith.constant 0 : index
    %c0_46 = arith.constant 0 : index
    %115 = vector.load %arg7[%c0_45, %c0_46] : memref<8x1xf32, #tpu.memory_space<vmem>>, vector<8x1xf32>
    tpu.vector_store %arg7[%c0_45, %c0_46], %114 {strides = array<i32>} : memref<8x1xf32, #tpu.memory_space<vmem>>, vector<8x1xf32>,
    return
  }
  func.func @transform_0(%arg0: i32) -> (i32, i32) {
    %c0_i32 = arith.constant 0 : i32
    %c0_i32_0 = arith.constant 0 : i32
    return %arg0, %c0_i32 : i32, i32
  }
  func.func @transform_1(%arg0: i32) -> (i32, i32) {
    %c0_i32 = arith.constant 0 : i32
    %c0_i32_0 = arith.constant 0 : i32
    return %arg0, %c0_i32 : i32, i32
  }
  func.func @transform_2(%arg0: i32) -> (i32, i32) {
    %c0_i32 = arith.constant 0 : i32
    %c0_i32_0 = arith.constant 0 : i32
    %c0_i32_1 = arith.constant 0 : i32
    return %c0_i32, %c0_i32_0 : i32, i32
  }
  func.func @transform_3(%arg0: i32) -> (i32, i32) {
    %c0_i32 = arith.constant 0 : i32
    %c0_i32_0 = arith.constant 0 : i32
    %c0_i32_1 = arith.constant 0 : i32
    return %c0_i32, %c0_i32_0 : i32, i32
  }
  func.func @transform_4(%arg0: i32) -> (i32, i32) {
    %c0_i32 = arith.constant 0 : i32
    %c0_i32_0 = arith.constant 0 : i32
    %c0_i32_1 = arith.constant 0 : i32
    return %c0_i32, %c0_i32_0 : i32, i32
  }
  func.func @transform_5(%arg0: i32) -> (i32, i32) {
    %c0_i32 = arith.constant 0 : i32
    %c0_i32_0 = arith.constant 0 : i32
    %c0_i32_1 = arith.constant 0 : i32
    return %c0_i32, %c0_i32_0 : i32, i32
  }
  func.func @transform_6(%arg0: i32) -> (i32, i32) {
    %c0_i32 = arith.constant 0 : i32
    %c0_i32_0 = arith.constant 0 : i32
    return %arg0, %c0_i32 : i32, i32
  }
  func.func @transform_7(%arg0: i32) -> (i32, i32) {
    %c0_i32 = arith.constant 0 : i32
    %c0_i32_0 = arith.constant 0 : i32
    return %arg0, %c0_i32 : i32, i32
  }
}

</mosaic_0001>

<bundles_post_ra>
// kernel: tpu_custom_call.1
= control target key start
LH: loop header
LB: loop body
LE: loop exit
PB: predicated region body
PF: predicated region fallthrough
CT: control target
= control target key end

     0   :  { %vm379_vm1 = vcmask 1045504   ;;  %vm79_vm8 = vcmask 7168   ;;  %vm375_vm9 = vcmask 244736   ;;  %s907_s0 = inlined_call_operand.vmem [shape: f32[8,128], index: 0, kind: input, shape index: {}]   ;;  %s908_s2 = inlined_call_operand.vmem [shape: f32[128,129], index: 2, kind: input, shape index: {}]   ;;  %s909_s3 = inlined_call_operand.vmem [shape: f32[128,129], index: 3, kind: input, shape index: {}]   ;;  %s910_s1 = inlined_call_operand.vmem [shape: f32[8,128], index: 1, kind: input, shape index: {}]   ;;  %s911_s4 = inlined_call_operand.vmem [shape: f32[30,256], index: 4, kind: input, shape index: {}]   ;;  %s912_s5 = inlined_call_operand.vmem [shape: f32[30,256], index: 5, kind: input, shape index: {}]   ;;  %s913_s7 = inlined_call_operand.vmem [shape: f32[8,1], index: 7, kind: output, shape index: {1}]   ;;  %s914_s6 = inlined_call_operand.vmem [shape: f32[8,1], index: 6, kind: output, shape index: {0}]  }
   0x1   :  { %v593_v0 = vld [vmem:[%s907_s0] sm:$0xff]  ;;  %v155_v1 = vld [vmem:[%s908_s2 + $0xf0] sm:$0xff]  ;;  %v156_v3 = vld [vmem:[%s908_s2 + $0xf8] sm:$0xff] }
   0x2   :  { %27 = vadd.xlane.f32.xlu0 %v593_v0  ;;  %v34_v2 = vmul.f32 %v593_v0, %v593_v0  ;;  %157 = vmatpush.msra.mxu0 %v155_v1  ;;  %v233_v4 = vld [vmem:[%s909_s3 + $0xf0] sm:$0xff]  ;;  %v234_v5 = vld [vmem:[%s909_s3 + $0xf8] sm:$0xff]  ;;  %v153_v6 = vld [vmem:[%s908_s2 + $0xe0] sm:$0xff] }
   0x3   :  { %180 = vmatpush.msra.mxu1 %v156_v3  ;;  %235 = vmatpush.msra.mxu2 %v233_v4  ;;  %v154_v7 = vld [vmem:[%s908_s2 + $0xe8] sm:$0xff]  ;;  %v231_v8 = vld [vmem:[%s909_s3 + $0xe0] sm:$0xff]  ;;  %v151_v10 = vld [vmem:[%s908_s2 + $0xd0] sm:$0xff] }
   0x4   :  { %35 = vadd.xlane.f32.xlu1 %v34_v2  ;;  %258 = vmatpush.msra.mxu3 %v234_v5  ;;  %v232_v9 = vld [vmem:[%s909_s3 + $0xe8] sm:$0xff]  ;;  %v152_v11 = vld [vmem:[%s908_s2 + $0xd8] sm:$0xff]  ;;  %v631_v12 = vld [vmem:[%s910_s1] sm:$0xff]  ;;  %v549_v5 = vmov 128.0  }
   0x5   :  { %158 = vmatpush.msra.mxu0 %v153_v6  ;;  %181 = vmatpush.msra.mxu1 %v154_v7  ;;  %v229_v13 = vld [vmem:[%s909_s3 + $0xd0] sm:$0xff]  ;;  %v230_v14 = vld [vmem:[%s909_s3 + $0xd8] sm:$0xff]  ;;  %v149_v15 = vld [vmem:[%s908_s2 + $0xc0] sm:$0xff]  ;;  %v37_v18 = vmul.f32 %v631_v12, %v631_v12  ;;  %529 = vrcp.f32 %v549_v5 }
   0x6   :  { %236 = vmatpush.msra.mxu2 %v231_v8  ;;  %259 = vmatpush.msra.mxu3 %v232_v9  ;;  %v150_v16 = vld [vmem:[%s908_s2 + $0xc8] sm:$0xff]  ;;  %v227_v17 = vld [vmem:[%s909_s3 + $0xc0] sm:$0xff]  ;;  %v147_v20 = vld [vmem:[%s908_s2 + $0xb0] sm:$0xff] }
   0x7   :  { %159 = vmatpush.msra.mxu0 %v151_v10  ;;  %182 = vmatpush.msra.mxu1 %v152_v11  ;;  %v228_v19 = vld [vmem:[%s909_s3 + $0xc8] sm:$0xff]  ;;  %v148_v21 = vld [vmem:[%s908_s2 + $0xb8] sm:$0xff]  ;;  %v225_v22 = vld [vmem:[%s909_s3 + $0xb0] sm:$0xff] }
   0x8   :  { %237 = vmatpush.msra.mxu2 %v229_v13  ;;  %260 = vmatpush.msra.mxu3 %v230_v14  ;;  %v226_v23 = vld [vmem:[%s909_s3 + $0xb8] sm:$0xff]  ;;  %v145_v24 = vld [vmem:[%s908_s2 + $0xa0] sm:$0xff]  ;;  %v146_v25 = vld [vmem:[%s908_s2 + $0xa8] sm:$0xff] }
   0x9   :  { %160 = vmatpush.msra.mxu0 %v149_v15  ;;  %183 = vmatpush.msra.mxu1 %v150_v16  ;;  %v223_v26 = vld [vmem:[%s909_s3 + $0xa0] sm:$0xff]  ;;  %v224_v27 = vld [vmem:[%s909_s3 + $0xa8] sm:$0xff]  ;;  %v143_v28 = vld [vmem:[%s908_s2 + $0x90] sm:$0xff] }
   0xa   :  { %29 = vadd.xlane.f32.xlu0 %v631_v12  ;;  %238 = vmatpush.msra.mxu2 %v227_v17  ;;  %v144_v29 = vld [vmem:[%s908_s2 + $0x98] sm:$0xff]  ;;  %v221_v30 = vld [vmem:[%s909_s3 + $0x90] sm:$0xff]  ;;  %v141_v32 = vld [vmem:[%s908_s2 + $0x80] sm:$0xff] }
   0xb   :  { %261 = vmatpush.msra.mxu3 %v228_v19  ;;  %161 = vmatpush.msra.mxu0 %v147_v20  ;;  %v222_v31 = vld [vmem:[%s909_s3 + $0x98] sm:$0xff]  ;;  %v142_v33 = vld [vmem:[%s908_s2 + $0x88] sm:$0xff]  ;;  %v219_v34 = vld [vmem:[%s909_s3 + $0x80] sm:$0xff]  ;;  %v530_v6 = vpop.eup %529 }
   0xc   :  { %38 = vadd.xlane.f32.xlu1 %v37_v18  ;;  %184 = vmatpush.msra.mxu1 %v148_v21  ;;  %v220_v35 = vld [vmem:[%s909_s3 + $0x88] sm:$0xff]  ;;  %v139_v36 = vld [vmem:[%s908_s2 + $0x70] sm:$0xff]  ;;  %v140_v37 = vld [vmem:[%s908_s2 + $0x78] sm:$0xff]  ;;  %v82_v7 = vmul.f32 128.0, %v530_v6  ;;  %vm86_vm0 = vweird.f32 %v530_v6  ;;  %v31_v21 = vmul.f32 %v631_v12, %v593_v0 }
   0xd   :  { %239 = vmatpush.msra.mxu2 %v225_v22  ;;  %262 = vmatpush.msra.mxu3 %v226_v23  ;;  %v217_v38 = vld [vmem:[%s909_s3 + $0x70] sm:$0xff]  ;;  %v218_v39 = vld [vmem:[%s909_s3 + $0x78] sm:$0xff]  ;;  %v137_v40 = vld [vmem:[%s908_s2 + $0x60] sm:$0xff] }
   0xe   :  { %162 = vmatpush.msra.mxu0 %v145_v24  ;;  %185 = vmatpush.msra.mxu1 %v146_v25  ;;  %v138_v41 = vld [vmem:[%s908_s2 + $0x68] sm:$0xff]  ;;  %v215_v42 = vld [vmem:[%s909_s3 + $0x60] sm:$0xff]  ;;  %v135_v44 = vld [vmem:[%s908_s2 + $0x50] sm:$0xff]  ;;  %v83_v8 = vsub.f32 1.0, %v82_v7 }
   0xf   :  { %240 = vmatpush.msra.mxu2 %v223_v26  ;;  %263 = vmatpush.msra.mxu3 %v224_v27  ;;  %v216_v43 = vld [vmem:[%s909_s3 + $0x68] sm:$0xff]  ;;  %v136_v45 = vld [vmem:[%s908_s2 + $0x58] sm:$0xff]  ;;  %v213_v46 = vld [vmem:[%s909_s3 + $0x50] sm:$0xff] }
  0x10   :  { %163 = vmatpush.msra.mxu0 %v143_v28  ;;  %186 = vmatpush.msra.mxu1 %v144_v29  ;;  %v214_v47 = vld [vmem:[%s909_s3 + $0x58] sm:$0xff]  ;;  %v133_v48 = vld [vmem:[%s908_s2 + $0x40] sm:$0xff]  ;;  %v134_v49 = vld [vmem:[%s908_s2 + $0x48] sm:$0xff]  ;;  %v84_v9 = vmul.f32 %v530_v6, %v83_v8 }
  0x11   :  { %241 = vmatpush.msra.mxu2 %v221_v30  ;;  %264 = vmatpush.msra.mxu3 %v222_v31  ;;  %v211_v50 = vld [vmem:[%s909_s3 + $0x40] sm:$0xff]  ;;  %v212_v51 = vld [vmem:[%s909_s3 + $0x48] sm:$0xff]  ;;  %v131_v52 = vld [vmem:[%s908_s2 + $0x30] sm:$0xff] }
  0x12   :  { %164 = vmatpush.msra.mxu0 %v141_v32  ;;  %187 = vmatpush.msra.mxu1 %v142_v33  ;;  %v132_v53 = vld [vmem:[%s908_s2 + $0x38] sm:$0xff]  ;;  %v209_v54 = vld [vmem:[%s909_s3 + $0x30] sm:$0xff]  ;;  %v129_v56 = vld [vmem:[%s908_s2 + $0x20] sm:$0xff]  ;;  %v85_v10 = vadd.f32 %v530_v6, %v84_v9 }
  0x13   :  { %242 = vmatpush.msra.mxu2 %v219_v34  ;;  %265 = vmatpush.msra.mxu3 %v220_v35  ;;  %v210_v55 = vld [vmem:[%s909_s3 + $0x38] sm:$0xff]  ;;  %v130_v57 = vld [vmem:[%s908_s2 + $0x28] sm:$0xff]  ;;  %v207_v58 = vld [vmem:[%s909_s3 + $0x20] sm:$0xff] }
  0x14   :  { %165 = vmatpush.msra.mxu0 %v139_v36  ;;  %188 = vmatpush.msra.mxu1 %v140_v37  ;;  %v208_v59 = vld [vmem:[%s909_s3 + $0x28] sm:$0xff]  ;;  %v127_v60 = vld [vmem:[%s908_s2 + $0x10] sm:$0xff]  ;;  %v128_v61 = vld [vmem:[%s908_s2 + $0x18] sm:$0xff]  ;;  %v87_v11 = vsel %vm86_vm0, %v530_v6, %v85_v10 }
  0x15   :  { %243 = vmatpush.msra.mxu2 %v217_v38  ;;  %266 = vmatpush.msra.mxu3 %v218_v39  ;;  %v205_v62 = vld [vmem:[%s909_s3 + $0x10] sm:$0xff]  ;;  %v206_v63 = vld [vmem:[%s909_s3 + $0x18] sm:$0xff]  ;;  %v125_v1 = vld [vmem:[%s908_s2] sm:$0xff] }
  0x16   :  { %166 = vmatpush.msra.mxu0 %v137_v40  ;;  %189 = vmatpush.msra.mxu1 %v138_v41  ;;  %v126_v2 = vld [vmem:[%s908_s2 + $0x8] sm:$0xff]  ;;  %v203_v3 = vld [vmem:[%s909_s3] sm:$0xff]  ;;  %v365_v36 = vld [vmem:[%s911_s4 + $0x30] sm:$0x3f] }
  0x17   :  { %244 = vmatpush.msra.mxu2 %v215_v42  ;;  %267 = vmatpush.msra.mxu3 %v216_v43  ;;  %v204_v4 = vld [vmem:[%s909_s3 + $0x8] sm:$0xff]  ;;  %v366_v37 = vld [vmem:[%s911_s4 + $0x38] sm:$0x3f]  ;;  %v363_v38 = vld [vmem:[%s911_s4 + $0x20] sm:$0xff] }
  0x18   :  { %167 = vmatpush.msra.mxu0 %v135_v44  ;;  %190 = vmatpush.msra.mxu1 %v136_v45  ;;  %v364_v39 = vld [vmem:[%s911_s4 + $0x28] sm:$0xff]  ;;  %v373_v43 = vld [vmem:[%s912_s5 + $0x30] sm:$0x3f]  ;;  %v374_v44 = vld [vmem:[%s912_s5 + $0x38] sm:$0x3f] }
  0x19   :  { %245 = vmatpush.msra.mxu2 %v213_v46  ;;  %268 = vmatpush.msra.mxu3 %v214_v47  ;;  %v371_v46 = vld [vmem:[%s912_s5 + $0x20] sm:$0xff]  ;;  %v372_v47 = vld [vmem:[%s912_s5 + $0x28] sm:$0xff] }
  0x1a   :  { %168 = vmatpush.msra.mxu0 %v133_v48  ;;  %191 = vmatpush.msra.mxu1 %v134_v49  ;;  %v361_v48 = vld [vmem:[%s911_s4 + $0x10] sm:$0xff]  ;;  %v362_v49 = vld [vmem:[%s911_s4 + $0x18] sm:$0xff] }
  0x1b   :  { %246 = vmatpush.msra.mxu2 %v211_v50  ;;  %269 = vmatpush.msra.mxu3 %v212_v51  ;;  %v369_v50 = vld [vmem:[%s912_s5 + $0x10] sm:$0xff]  ;;  %v370_v51 = vld [vmem:[%s912_s5 + $0x18] sm:$0xff] }
  0x1c   :  { %169 = vmatpush.msra.mxu0 %v131_v52  ;;  %192 = vmatpush.msra.mxu1 %v132_v53  ;;  %v359_v52 = vld [vmem:[%s911_s4] sm:$0xff]  ;;  %v360_v53 = vld [vmem:[%s911_s4 + $0x8] sm:$0xff] }
  0x1d   :  { %247 = vmatpush.msra.mxu2 %v209_v54  ;;  %270 = vmatpush.msra.mxu3 %v210_v55  ;;  %v367_v54 = vld [vmem:[%s912_s5] sm:$0xff]  ;;  %v368_v55 = vld [vmem:[%s912_s5 + $0x8] sm:$0xff] }
  0x1e   :  { %170 = vmatpush.msra.mxu0 %v129_v56  ;;  %193 = vmatpush.msra.mxu1 %v130_v57 }
  0x1f   :  { %248 = vmatpush.msra.mxu2 %v207_v58  ;;  %271 = vmatpush.msra.mxu3 %v208_v59 }
  0x20   :  { %171 = vmatpush.msra.mxu0 %v127_v60  ;;  %194 = vmatpush.msra.mxu1 %v128_v61 }
  0x21   :  { %249 = vmatpush.msra.mxu2 %v205_v62  ;;  %272 = vmatpush.msra.mxu3 %v206_v63 }
  0x22   :  { %172 = vmatpush.msra.mxu0 %v125_v1  ;;  %195 = vmatpush.msra.mxu1 %v126_v2 }
  0x23   :  { %250 = vmatpush.msra.mxu2 %v203_v3  ;;  %273 = vmatpush.msra.mxu3 %v204_v4 }
  0x24   :  { %520 = vmatpush.msk.msrb.mxu0 %vm379_vm1, %v373_v43  ;;  %522 = vmatpush.msk.msrb.mxu1 %vm379_vm1, %v374_v44 }
  0x25   :  { %524 = vmatpush.msk.msrb.mxu2 %vm379_vm1, %v365_v36  ;;  %526 = vmatpush.msk.msrb.mxu3 %vm379_vm1, %v366_v37 }
  0x26   :  { %399 = vmatpush.msrb.mxu0 %v371_v46  ;;  %419 = vmatpush.msrb.mxu1 %v372_v47 }
  0x27   :  { %448 = vmatpush.msrb.mxu2 %v363_v38  ;;  %468 = vmatpush.msrb.mxu3 %v364_v39 }
  0x28   :  { %400 = vmatpush.msrb.mxu0 %v369_v50  ;;  %420 = vmatpush.msrb.mxu1 %v370_v51 }
  0x29   :  { %449 = vmatpush.msrb.mxu2 %v361_v48  ;;  %469 = vmatpush.msrb.mxu3 %v362_v49 }
  0x2a   :  { %401 = vmatpush.msrb.mxu0 %v367_v54  ;;  %421 = vmatpush.msrb.mxu1 %v368_v55 }
  0x2b   :  { %450 = vmatpush.msrb.mxu2 %v359_v52  ;;  %470 = vmatpush.msrb.mxu3 %v360_v53 }
  0x75   :  { %v798_v13 = vpop.xlane.xlu0 %27 }
  0x76   :  { %v88_v14 = vmul.f32 %v87_v11, %v798_v13  ;;  %v41_v27 = vmul.f32 %v798_v13, %v798_v13 }
  0x77   :  { %v36_v22 = vpop.xlane.xlu1 %35 }
  0x78   :  { %v89_v15 = vsub.f32 %v593_v0, %v88_v14  ;;  %v40_v25 = vmul.f32 128.0, %v36_v22 }
  0x7a   :  { %173 = vmatmul.f32.vlgmr.msra.gmra.mxu0 %v89_v15  ;;  %196 = vmatmul.f32.vlgmr.msra.gmra.mxu1 %v89_v15  ;;  %v92_v16 = vmul.f32 %v89_v15, %v89_v15  ;;  %v42_v29 = vsub.f32 %v40_v25, %v41_v27 }
  0x7b   :  { %251 = vmatmul.f32.vlgmr.msra.gmra.mxu2 %v89_v15  ;;  %274 = vmatmul.f32.vlgmr.msra.gmra.mxu3 %v89_v15 }
  0x7c   :  { %93 = vadd.xlane.f32.xlu2 %v92_v16 }
  0x7d   :  { %v802_v17 = vpop.xlane.xlu0 %29 }
  0x7e   :  { %v90_v18 = vmul.f32 %v87_v11, %v802_v17  ;;  %v44_v26 = vmul.f32 %v802_v17, %v802_v17  ;;  %v48_v16 = vmul.f32 %v802_v17, %v798_v13 }
  0x7f   :  { %v39_v23 = vpop.xlane.xlu1 %38 }
  0x80   :  { %v91_v19 = vsub.f32 %v631_v12, %v90_v18  ;;  %v43_v24 = vmul.f32 128.0, %v39_v23 }
  0x82   :  { %176 = vmatmul.f32.gmra.mxu0 %v91_v19  ;;  %199 = vmatmul.f32.gmra.mxu1 %v91_v19  ;;  %v108_v20 = vmul.f32 %v91_v19, %v91_v19  ;;  %v45_v28 = vsub.f32 %v43_v24, %v44_v26 }
  0x83   :  { %254 = vmatmul.f32.gmra.mxu2 %v91_v19  ;;  %277 = vmatmul.f32.gmra.mxu3 %v91_v19 }
  0x84   :  { %109 = vadd.xlane.f32.xlu2 %v108_v20  ;;  %v46_v30 = vmul.f32 %v45_v28, %v42_v29 }
  0x86   :  { %v50_v31 = vmax.f32 %v46_v30, 1e-12 }
  0x88   :  { %531 = vrsqrt.f32 %v50_v31  ;;  %vm58_vm2 = vcmp.eq.f32.partialorder %v50_v31, inf  ;;  %v61_v42 = vand.u32 2147483648, %v50_v31  ;;  %vm60_vm3 = vcmp.eq.f32.partialorder %v50_v31, 0.0 }
  0x8c   :  { %32 = vadd.xlane.f32.xlu2 %v31_v21 }
  0x8e   :  { %v532_v32 = vpop.eup %531 }
  0x8f   :  { %v52_v33 = vmul.f32 %v532_v32, %v50_v31 }
  0x91   :  { %v53_v34 = vmul.f32 %v532_v32, %v52_v33 }
  0x93   :  { %v54_v0 = vmul.f32 0.5, %v53_v34 }
  0x95   :  { %v55_v12 = vsub.f32 1.5, %v54_v0 }
  0x97   :  { %v56_v35 = vmul.f32 %v532_v32, %v55_v12 }
  0x99   :  { %v57_v40 = vmul.f32 %v56_v35, %v50_v31 }
  0x9b   :  { %v59_v41 = vsel %vm58_vm2, %v50_v31, %v57_v40 }
  0x9c   :  { %v62_v45 = vsel %vm60_vm3, %v61_v42, %v59_v41 }
  0x9d   :  { %533 = vrcp.f32 %v62_v45  ;;  %v74_v9 = vand.u32 2147483648, %v62_v45  ;;  %vm68_vm5 = vweird.f32 %v62_v45  ;;  %v72_v11 = vand.u32 2147483647, %v62_v45 }
  0x9f   :  { %v75_v21 = vor.u32 1.1754944e-38, %v74_v9  ;;  %vm73_vm7 = vcmp.eq.f32.partialorder %v72_v11, 8.507059e+37 }
  0xa3   :  { %v534_v56 = vpop.eup %533 }
  0xa4   :  { %v64_v59 = vmul.f32 %v534_v56, %v62_v45  ;;  %vm69_vm4 = vweird.f32 %v534_v56 }
  0xa5   :  { %vm70_vm6 = vmor %vm68_vm5, %vm69_vm4 }
  0xa6   :  { %v65_v60 = vsub.f32 1.0, %v64_v59 }
  0xa8   :  { %v66_v3 = vmul.f32 %v534_v56, %v65_v60 }
  0xaa   :  { %v67_v6 = vadd.f32 %v534_v56, %v66_v3  ;;  %v323_v3 = vlaneseq }
  0xac   :  { %v71_v18 = vsel %vm70_vm6, %v534_v56, %v67_v6 }
  0xad   :  { %v76_v26 = vsel %vm73_vm7, %v75_v21, %v71_v18 }
  0xef   :  { %v94_v57 = vpop.xlane.xlu2 %93 }
  0xf0   :  { %v864_v58 = vmul.f32 0.007874016, %v94_v57 }
  0xf2   :  { %535 = vrsqrt.f32 %v864_v58  ;;  %vm103_vm10 = vcmp.eq.f32.partialorder %v864_v58, inf  ;;  %v106_v54 = vand.u32 2147483648, %v864_v58  ;;  %vm105_vm12 = vcmp.eq.f32.partialorder %v864_v58, 0.0 }
  0xf7   :  { %v174_v62 = vpop.f32.mrf.mxu0  ;;  %v110_v63 = vpop.xlane.xlu2 %109 }
  0xf8   :  { %v536_v61 = vpop.eup %535  ;;  %v197_v1 = vpop.f32.mrf.mxu1  ;;  %v867_v2 = vmul.f32 0.007874016, %v110_v63 }
  0xf9   :  { %v97_v4 = vmul.f32 %v536_v61, %v864_v58 }
  0xfa   :  { %537 = vrsqrt.f32 %v867_v2  ;;  %vm119_vm11 = vcmp.eq.f32.partialorder %v867_v2, inf  ;;  %v122_v55 = vand.u32 2147483648, %v867_v2  ;;  %vm121_vm13 = vcmp.eq.f32.partialorder %v867_v2, 0.0 }
  0xfb   :  { %v98_v5 = vmul.f32 %v536_v61, %v97_v4 }
  0xfd   :  { %v99_v10 = vmul.f32 0.5, %v98_v5 }
  0xfe   :  { %v252_v7 = vpop.f32.mrf.mxu2  ;;  %v275_v8 = vpop.f32.mrf.mxu3 }
  0xff   :  { %v33_v14 = vpop.xlane.xlu2 %32  ;;  %v177_v20 = vpop.f32.mrf.mxu0  ;;  %v100_v22 = vsub.f32 1.5, %v99_v10 }
 0x100   :  { %v538_v15 = vpop.eup %537  ;;  %v47_v19 = vmul.f32 128.0, %v33_v14  ;;  %v200_v24 = vpop.f32.mrf.mxu1  ;;  %v281_v28 = vmul.f32 %v177_v20, %v174_v62  ;;  %v287_v30 = vmul.f32 %v252_v7, %v177_v20 }
 0x101   :  { %v113_v23 = vmul.f32 %v538_v15, %v867_v2  ;;  %v282_v31 = vmul.f32 %v200_v24, %v197_v1  ;;  %v101_v13 = vmul.f32 %v536_v61, %v100_v22  ;;  %v288_v36 = vmul.f32 %v275_v8, %v200_v24 }
 0x102   :  { %v49_v25 = vsub.f32 %v47_v19, %v48_v16 }
 0x103   :  { %v114_v27 = vmul.f32 %v538_v15, %v113_v23  ;;  %v102_v43 = vmul.f32 %v101_v13, %v864_v58 }
 0x104   :  { %v77_v29 = vmul.f32 %v76_v26, %v49_v25 }
 0x105   :  { %v115_v17 = vmul.f32 0.5, %v114_v27  ;;  %v104_v52 = vsel %vm103_vm10, %v864_v58, %v102_v43 }
 0x106   :  { %v255_v32 = vpop.f32.mrf.mxu2  ;;  %v278_v33 = vpop.f32.mrf.mxu3  ;;  %v78_v34 = vsub.f32 1.0, %v77_v29  ;;  %v107_v56 = vsel %vm105_vm12, %v106_v54, %v104_v52 }
 0x107   :  { %v283_v0 = vmul.f32 %v255_v32, %v252_v7  ;;  %v289_v12 = vmul.f32 %v255_v32, %v174_v62  ;;  %v284_v35 = vmul.f32 %v278_v33, %v275_v8  ;;  %v290_v37 = vmul.f32 %v278_v33, %v197_v1 }
 0x108   :  { %v116_v38 = vsub.f32 1.5, %v115_v17  ;;  %80 = vst.msk [vmem:[%s913_s7] sm:$0xff] %vm79_vm8, %v78_v34  ;;  %v324_v8 = vand.u32 127, %v323_v3 }
 0x109   :  { %v285_v39 = vadd.f32 %v283_v0, %v281_v28  ;;  %v291_v40 = vsub.f32 %v287_v30, %v289_v12  ;;  %v286_v41 = vadd.f32 %v284_v35, %v282_v31  ;;  %v292_v42 = vsub.f32 %v288_v36, %v290_v37 }
 0x10a   :  { %v117_v44 = vmul.f32 %v538_v15, %v116_v38  ;;  %vm326_vm15 = vcmp.lt.s32.totalorder %v324_v8, 30 }
 0x10b   :  { %v293_v45 = vmul.f32 %v285_v39, %v285_v39  ;;  %v295_v46 = vmul.f32 %v291_v40, %v291_v40  ;;  %v294_v47 = vmul.f32 %v286_v41, %v286_v41  ;;  %521 = vmatmul.msk.f32.vlgmr.msrb.gmra.mxu0 %vm375_vm9, %v291_v40  ;;  %523 = vmatmul.msk.f32.vlgmr.msrb.gmra.mxu1 %vm375_vm9, %v291_v40 }
 0x10c   :  { %v296_v48 = vmul.f32 %v292_v42, %v292_v42  ;;  %525 = vmatmul.msk.f32.vlgmr.msrb.gmra.mxu2 %vm375_vm9, %v285_v39  ;;  %527 = vmatmul.msk.f32.vlgmr.msrb.gmra.mxu3 %vm375_vm9, %v285_v39  ;;  %v118_v49 = vmul.f32 %v117_v44, %v867_v2 }
 0x10d   :  { %v297_v50 = vadd.f32 %v295_v46, %v293_v45 }
 0x10e   :  { %v298_v51 = vadd.f32 %v296_v48, %v294_v47  ;;  %v120_v53 = vsel %vm119_vm11, %v867_v2, %v118_v49 }
 0x10f   :  { %539 = vrsqrt.f32 %v297_v50  ;;  %v123_v57 = vsel %vm121_vm13, %v122_v55, %v120_v53  ;;  %vm306_vm14 = vcmp.eq.f32.partialorder %v297_v50, inf  ;;  %v309_v2 = vand.u32 2147483648, %v297_v50 }
 0x110   :  { %541 = vrsqrt.f32 %v298_v51  ;;  %v892_v59 = vmul.f32 %v123_v57, %v107_v56  ;;  %vm308_vm0 = vcmp.eq.f32.partialorder %v297_v50, 0.0  ;;  %vm318_vm1 = vcmp.eq.f32.partialorder %v298_v51, inf }
 0x111   :  { %v321_v16 = vand.u32 2147483648, %v298_v51  ;;  %vm320_vm2 = vcmp.eq.f32.partialorder %v298_v51, 0.0 }
 0x112   :  { %vm493_vm9 = vcmp.gt.f32.partialorder %v892_v59, 0.0 }
 0x113   :  { %v494_v44 = vsel %vm493_vm9, %v892_v59, 1.0 }
 0x114   :  { %v506_v57 = vand.u32 2147483648, %v494_v44 }
 0x115   :  { %v540_v60 = vpop.eup %539 }
 0x116   :  { %v542_v61 = vpop.eup %541  ;;  %v300_v62 = vmul.f32 %v540_v60, %v297_v50 }
 0x117   :  { %v312_v63 = vmul.f32 %v542_v61, %v298_v51 }
 0x118   :  { %v301_v1 = vmul.f32 %v540_v60, %v300_v62 }
 0x119   :  { %v313_v4 = vmul.f32 %v542_v61, %v312_v63 }
 0x11a   :  { %v302_v5 = vmul.f32 0.5, %v301_v1 }
 0x11b   :  { %v314_v6 = vmul.f32 0.5, %v313_v4  ;;  %v507_v4 = vor.u32 1.1754944e-38, %v506_v57 }
 0x11c   :  { %v303_v7 = vsub.f32 1.5, %v302_v5 }
 0x11d   :  { %v315_v9 = vsub.f32 1.5, %v314_v6 }
 0x11e   :  { %v304_v10 = vmul.f32 %v540_v60, %v303_v7 }
 0x11f   :  { %v316_v58 = vmul.f32 %v542_v61, %v315_v9  ;;  %v504_v61 = vand.u32 2147483647, %v494_v44 }
 0x120   :  { %v305_v11 = vmul.f32 %v304_v10, %v297_v50 }
 0x121   :  { %v317_v14 = vmul.f32 %v316_v58, %v298_v51 }
 0x122   :  { %v307_v15 = vsel %vm306_vm14, %v297_v50, %v305_v11  ;;  %vm500_vm14 = vweird.f32 %v494_v44 }
 0x123   :  { %v310_v18 = vsel %vm308_vm0, %v309_v2, %v307_v15  ;;  %v319_v19 = vsel %vm318_vm1, %v298_v51, %v317_v14  ;;  %vm505_vm1 = vcmp.eq.f32.partialorder %v504_v61, 8.507059e+37 }
 0x124   :  { %v328_v20 = vsel %vm326_vm15, %v310_v18, 0.0  ;;  %v322_v21 = vsel %vm320_vm2, %v321_v16, %v319_v19  ;;  %v334_v22 = vsel %vm326_vm15, 0.0, %v310_v18 }
 0x125   :  { %332 = vadd.xlane.f32.xlu0 %v328_v20  ;;  %v336_v23 = vsel %vm79_vm8, %v322_v21, 0.0 }
 0x126   :  { %v337_v24 = vadd.f32 %v336_v23, %v334_v22 }
 0x128   :  { %338 = vadd.xlane.f32.xlu1 %v337_v24 }
 0x188   :  { %v403_v25 = vpop.f32.mrf.mxu0  ;;  %v423_v26 = vpop.f32.mrf.mxu1 }
 0x18f   :  { %v452_v27 = vpop.f32.mrf.mxu2  ;;  %v472_v28 = vpop.f32.mrf.mxu3 }
 0x190   :  { %v453_v29 = vadd.f32 %v452_v27, %v403_v25  ;;  %v473_v30 = vadd.f32 %v472_v28, %v423_v26 }
 0x192   :  { %v475_v31 = vmax.f32 %v453_v29, %v473_v30 }
 0x194   :  { %476 = vmax.xlane.f32.xlu0 %v475_v31 }
 0x198   :  { %v333_v33 = vpop.xlane.xlu0 %332 }
 0x19b   :  { %v339_v32 = vpop.xlane.xlu1 %338 }
 0x19c   :  { %v340_v13 = vadd.f32 %v339_v32, %v333_v33 }
 0x19e   :  { %vm341_vm3 = vcmp.gt.f32.partialorder %v340_v13, 0.0 }
 0x19f   :  { %v342_v17 = vsel %vm341_vm3, %v340_v13, 1.0 }
 0x1a0   :  { %543 = vrcp.f32 %v342_v17  ;;  %v354_v37 = vand.u32 2147483648, %v342_v17  ;;  %vm348_vm5 = vweird.f32 %v342_v17  ;;  %v352_v38 = vand.u32 2147483647, %v342_v17 }
 0x1a2   :  { %v355_v40 = vor.u32 1.1754944e-38, %v354_v37  ;;  %vm353_vm7 = vcmp.eq.f32.partialorder %v352_v38, 8.507059e+37 }
 0x1a6   :  { %v544_v34 = vpop.eup %543 }
 0x1a7   :  { %v344_v0 = vmul.f32 %v544_v34, %v342_v17  ;;  %vm349_vm4 = vweird.f32 %v544_v34 }
 0x1a8   :  { %vm350_vm6 = vmor %vm348_vm5, %vm349_vm4 }
 0x1a9   :  { %v345_v12 = vsub.f32 1.0, %v344_v0 }
 0x1ab   :  { %v346_v35 = vmul.f32 %v544_v34, %v345_v12 }
 0x1ad   :  { %v347_v36 = vadd.f32 %v544_v34, %v346_v35 }
 0x1af   :  { %v351_v39 = vsel %vm350_vm6, %v544_v34, %v347_v36 }
 0x1b0   :  { %v356_v41 = vsel %vm353_vm7, %v355_v40, %v351_v39 }
 0x1b1   :  { %v357_v42 = vmul.f32 %v356_v41, %v333_v33 }
 0x1b3   :  { %v358_v43 = vsel %vm341_vm3, %v357_v42, 1.0 }
 0x1b4   :  { %545 = vrcp.f32 %v358_v43  ;;  %v489_v54 = vand.u32 2147483648, %v358_v43  ;;  %vm483_vm11 = vweird.f32 %v358_v43  ;;  %v487_v55 = vand.u32 2147483647, %v358_v43 }
 0x1b5   :  { %547 = vrcp.f32 %v494_v44 }
 0x1b6   :  { %v490_v62 = vor.u32 1.1754944e-38, %v489_v54  ;;  %vm488_vm0 = vcmp.eq.f32.partialorder %v487_v55, 8.507059e+37 }
 0x1ba   :  { %v546_v45 = vpop.eup %545 }
 0x1bb   :  { %v548_v46 = vpop.eup %547  ;;  %v479_v47 = vmul.f32 %v546_v45, %v358_v43  ;;  %vm484_vm10 = vweird.f32 %v546_v45 }
 0x1bc   :  { %v496_v48 = vmul.f32 %v548_v46, %v494_v44  ;;  %vm501_vm12 = vweird.f32 %v548_v46  ;;  %vm485_vm13 = vmor %vm483_vm11, %vm484_vm10 }
 0x1bd   :  { %v480_v49 = vsub.f32 1.0, %v479_v47  ;;  %vm502_vm15 = vmor %vm500_vm14, %vm501_vm12 }
 0x1be   :  { %v497_v50 = vsub.f32 1.0, %v496_v48 }
 0x1bf   :  { %v481_v51 = vmul.f32 %v546_v45, %v480_v49 }
 0x1c0   :  { %v498_v52 = vmul.f32 %v548_v46, %v497_v50 }
 0x1c1   :  { %v482_v53 = vadd.f32 %v546_v45, %v481_v51 }
 0x1c2   :  { %v499_v56 = vadd.f32 %v548_v46, %v498_v52 }
 0x1c3   :  { %v486_v60 = vsel %vm485_vm13, %v546_v45, %v482_v53 }
 0x1c4   :  { %v503_v63 = vsel %vm502_vm15, %v548_v46, %v499_v56  ;;  %v491_v3 = vsel %vm488_vm0, %v490_v62, %v486_v60 }
 0x1c5   :  { %v508_v6 = vsel %vm505_vm1, %v507_v4, %v503_v63 }
 0x207   :  { %v477_v1 = vpop.xlane.xlu0 %476 }
 0x208   :  { %v492_v5 = vmul.f32 %v491_v3, %v477_v1 }
 0x20a   :  { %v509_v7 = vmul.f32 %v508_v6, %v492_v5 }
 0x20c   :  { %v510_v8 = vsel %vm493_vm9, %v509_v7, 0.0 }
 0x20d   :  { %511 = vst.msk [vmem:[%s914_s6] sm:$0xff] %vm79_vm8, %v510_v8 }

</bundles_post_ra>
